<compile_context>
chip_gen: v6e
topology: v6e:2x2x1
jax: 0.10.0
libtpu: 0.0.40
codegen_flags: <defaults>
</compile_context>

<pallas_src>
import functools

import jax
import jax.numpy as jnp
from jax.experimental import pallas as pl
from jax.experimental.pallas import tpu as pltpu


def _cdiv(a, b):
    return -(-a // b)


def _round_up(a, m):
    return _cdiv(a, m) * m


def _phys_vmem_bytes():
    # Per-generation VMEM query (128 MiB on v5e/v6e, 64 MiB per TC on v7x);
    # fall back to the most conservative value if the query is unavailable.
    try:
        return int(pltpu.get_tpu_info().vmem_capacity_bytes)
    except Exception:
        return 64 * 1024 * 1024


def _pbm_value_kernel(w_ref, x_ref, o_ref, acc_ref, *,
                      k, tk, kps, kb_last, chunk, w_resident):
    # w_ref:   (1, k_pad) resident weight row, or (1, tk) streamed weight tile
    # x_ref:   (bt, tk)   activation tile (native dtype)
    # o_ref:   (1, 1, 1, bt) lane-dense per-sample raw weighted sums
    # acc_ref: (bt, 1)    f32 running partial sums (VMEM scratch)
    j = pl.program_id(2)
    kb = pl.program_id(0) * kps + j          # logical K-block index
    kb_fetch = jnp.minimum(kb, kb_last)      # K-block actually fetched (clamped)
    bt = acc_ref.shape[0]

    @pl.when(j == 0)
    def _init():
        acc_ref[...] = jnp.zeros_like(acc_ref)

    def _reduce_tile(masked):
        # Chunked multiply-reduce: keeps per-chunk f32 temporaries ~1 MiB so a
        # large streamed DMA tile never forces spills.
        total = jnp.zeros((bt, 1), jnp.float32)
        for c0 in range(0, tk, chunk):
            cw = min(chunk, tk - c0)
            xs = x_ref[:, c0:c0 + cw]
            if w_resident and kb_last > 0:
                # Resident multi-block weight row: dynamic 128-aligned slice.
                start = pl.multiple_of(kb_fetch * tk + c0, 128)
                ws = w_ref[:, pl.ds(start, cw)]
            else:
                # Streamed tile (or single-K-block resident row): static slice.
                ws = w_ref[:, c0:c0 + cw]
            prod = xs * ws                      # native-dtype mul (packed vregs for bf16)
            if masked:
                lane = jax.lax.broadcasted_iota(jnp.int32, (bt, cw), 1)
                prod = jnp.where(kb * tk + c0 + lane < k, prod, 0)
            total = total + jnp.sum(prod.astype(jnp.float32), axis=1, keepdims=True)
        return total

    # Mask only the ragged-tail step (and clamped duplicate steps); the hot
    # path stays free of the extra compare/select so it cannot flip the kernel
    # from HBM-bound to VALU-bound on v7x.
    in_bounds = kb * tk + tk <= k

    @pl.when(in_bounds)
    def _fast():
        acc_ref[...] += _reduce_tile(masked=False)

    @pl.when(jnp.logical_not(in_bounds))
    def _tail():
        acc_ref[...] += _reduce_tile(masked=True)

    @pl.when(j == pl.num_programs(2) - 1)
    def _finalize():
        col = acc_ref[...]                                        # (bt, 1)
        rows = jax.lax.broadcasted_iota(jnp.int32, (bt, bt), 0)
        cols = jax.lax.broadcasted_iota(jnp.int32, (bt, bt), 1)
        diag = jnp.where(rows == cols, col, 0.0)                  # diag[r, r] = col[r]
        row = jnp.sum(diag, axis=0, keepdims=True)                # lane-dense (1, bt)
        o_ref[...] = row.reshape(1, 1, 1, bt)


def pbm_value_net(x_nchw, weight, bias):
    """x_nchw: (N, C, H, W); weight: (1, C, 1, 1); bias: (1,). Returns (N, 1, 1, 1) f32."""
    n, c, h, w = x_nchw.shape
    hw = h * w
    k = c * hw
    itemsize = x_nchw.dtype.itemsize

    phys_vmem = _phys_vmem_bytes()
    # ~8 MiB streamed x tile on v7x (64 MiB VMEM), 10 MiB on v5e/v6e (128 MiB):
    # big enough to amortize the ~0.35 us/step overhead against DMA time.
    target_tile_bytes = min(10 << 20, phys_vmem // 8)

    # Batch tile: exact N (block == full dim, zero padded rows) for N <= 256,
    # otherwise a multiple of 8 chosen to minimize padded rows.
    if n <= 256:
        bt = n
    else:
        bt = _round_up(_cdiv(n, _cdiv(n, 128)), 8)
    n_blocks = _cdiv(n, bt)

    # K tile: multiple of 128 lanes, sized from the native activation itemsize.
    tk_cap = max(128, (target_tile_bytes // max(bt * itemsize, 1)) // 128 * 128)
    tk = min(_round_up(k, 128), tk_cap)
    if tk >= k:
        tk = k                      # single K block covering exactly K (no tail)
    k_blocks = _cdiv(k, tk)
    kb_last = k_blocks - 1

    # With a single batch block, split the K reduction across two blocks on the
    # leading parallel axis so both v7x TensorCores stream HBM.
    split = 2 if (n_blocks == 1 and k_blocks >= 2) else 1
    kps = _cdiv(k_blocks, split)
    needs_clamp = split * kps != k_blocks     # only when split == 2 and k_blocks is odd

    def _kb_index(s, j):
        kb = s * kps + j
        return jnp.minimum(kb, kb_last) if needs_clamp else kb

    # In-kernel reduction chunk (lanes): keeps per-chunk f32 temporaries ~1 MiB.
    chunk = min(tk, max(128, ((1 << 18) // max(bt, 1)) // 128 * 128))

    # Flattened activations: contiguous reshape only, NO padding copy of x.
    x_flat = x_nchw.reshape(n, k)

    # 1x1-conv weight broadcast over spatial positions -> (1, K) row.  For
    # bf16/f16 activations keep weights in the same dtype (half the weight
    # traffic, packed-vreg multiply); otherwise f32.
    if jnp.issubdtype(x_nchw.dtype, jnp.floating) and itemsize < 4:
        w_dtype, w_isz = x_nchw.dtype, itemsize
    else:
        w_dtype, w_isz = jnp.float32, 4
    w_row = jnp.broadcast_to(
        weight.reshape(c, 1).astype(w_dtype), (c, hw)).reshape(1, k)
    k_pad_w = k_blocks * tk
    if k_pad_w != k:
        # Tiny (weights only); guarantees weight blocks never read out of bounds.
        w_row = jnp.pad(w_row, ((0, 0), (0, k_pad_w - k)))

    # Keep the whole weight row resident in VMEM (fetched once) when small,
    # otherwise stream (1, tk) tiles alongside x.
    w_resident = k_pad_w * w_isz <= (2 << 20)
    if w_resident:
        w_spec = pl.BlockSpec((1, k_pad_w), lambda s, i, j: (0, 0))
        w_vmem = k_pad_w * w_isz
    else:
        w_spec = pl.BlockSpec((1, tk), lambda s, i, j: (0, _kb_index(s, j)))
        w_vmem = tk * w_isz

    x_spec = pl.BlockSpec((bt, tk), lambda s, i, j: (i, _kb_index(s, j)))
    out_spec = pl.BlockSpec((1, 1, 1, bt), lambda s, i, j: (s, i, 0, 0))

    kernel = functools.partial(
        _pbm_value_kernel, k=k, tk=tk, kps=kps, kb_last=kb_last,
        chunk=chunk, w_resident=w_resident)

    # VMEM budget: double-buffered x tile + weight + accumulator + chunk temps.
    need = (2 * bt * tk * itemsize + 2 * w_vmem + 8 * bt
            + 4 * bt * min(tk, chunk) * 4)
    vmem_limit = max(32 << 20, need * 3 // 2 + (8 << 20))
    vmem_limit = int(min(vmem_limit, phys_vmem - (8 << 20)))

    x_bytes = n * k * itemsize
    w_bytes = k_pad_w * w_isz if w_resident else split * n_blocks * kps * tk * w_isz
    out_bytes = split * n_blocks * bt * 4

    partial = pl.pallas_call(
        kernel,
        out_shape=jax.ShapeDtypeStruct((split, n_blocks, 1, bt), jnp.float32),
        grid_spec=pltpu.PrefetchScalarGridSpec(
            num_scalar_prefetch=0,
            grid=(split, n_blocks, kps),
            in_specs=[w_spec, x_spec],
            out_specs=out_spec,
            scratch_shapes=[pltpu.VMEM((bt, 1), jnp.float32)],
        ),
        compiler_params=pltpu.CompilerParams(
            dimension_semantics=("parallel", "parallel", "arbitrary"),
            vmem_limit_bytes=vmem_limit,
        ),
        cost_estimate=pl.CostEstimate(
            flops=2 * n * k,
            transcendentals=0,
            bytes_accessed=int(x_bytes + w_bytes + out_bytes),
        ),
    )(w_row, x_flat)

    # Combine split-K partials, drop padded batch lanes, then apply the 1/HW
    # mean scaling and the conv bias (N scalars: negligible wrapper work).
    sums = partial[:, :, 0, :].sum(axis=0).reshape(-1)[:n]
    out = sums * (1.0 / hw) + bias.astype(jnp.float32)
    return out.reshape(n, 1, 1, 1)


def _reference(x_nchw, weight, bias):
    # Pure-JAX reference of the PyTorch forward (4-D input path).
    y = jnp.einsum(
        "nchw,oc->nohw",
        x_nchw.astype(jnp.float32),
        weight.reshape(1, -1).astype(jnp.float32),
    ) + bias.reshape(1, 1, 1, 1)
    return jnp.mean(y, axis=(1, 2, 3), keepdims=True)


if __name__ == "__main__":
    key = jax.random.PRNGKey(0)
    k_x, k_w, k_b = jax.random.split(key, 3)

    N, C, H, W = 2, 4, 16, 16
    x = jax.random.normal(k_x, (N, C, H, W), dtype=jnp.float32)

    # Deterministic synthetic Conv2d(in_dim=C, out=1, kernel_size=1) parameters.
    fan_in = C  # kernel_size=1 -> fan_in = C*1*1
    bound = 1.0 / (fan_in ** 0.5)
    conv_w = jax.random.uniform(k_w, (1, C, 1, 1), minval=-bound, maxval=bound, dtype=jnp.float32)
    conv_b = jax.random.uniform(k_b, (1,), minval=-bound, maxval=bound, dtype=jnp.float32)

    result = pbm_value_net(x, conv_w, conv_b)
    result = jax.block_until_ready(result)

    ref = _reference(x, conv_w, conv_b)
    assert result.shape == (N, 1, 1, 1)
    assert jnp.allclose(result, ref, atol=1e-5, rtol=1e-5), (result, ref)

    # TODO(synk): the 3-D-input branch of the PyTorch forward returns a Python
    # scalar via .item(); only the batched 4-D path is implemented here
    # (callers can .item() on a size-1 output).
    print("KERNEL_OK")
</pallas_src>

<mosaic_0001>
module attributes {stable_mosaic.version = 11 : i64} {
  func.func @_pbm_value_kernel(%arg0: i32, %arg1: i32, %arg2: i32, %arg3: memref<1x1024xf32, #tpu.memory_space<vmem>>, %arg4: memref<2x1024xf32, #tpu.memory_space<vmem>>, %arg5: memref<1x1x1x2xf32, #tpu.memory_space<vmem>>, %arg6: memref<2x1xf32, #tpu.memory_space<vmem>>) attributes {dimension_semantics = [#tpu.dimension_semantics<parallel>, #tpu.dimension_semantics<parallel>, #tpu.dimension_semantics<arbitrary>], iteration_bounds = array<i64: 1, 1, 1>, scalar_prefetch = 0 : i64, scratch_operands = 1 : i64, tpu.core_type = #tpu.core_type<tc>, window_params = [{pipeline_mode = #tpu.pipeline_mode<synchronous>, transform_indices = @transform_0, window_bounds = array<i64: 1, 1024>}, {transform_indices = @transform_1, window_bounds = array<i64: 2, 1024>}, {transform_indices = @transform_2, window_bounds = array<i64: 1, 1, 1, 2>}]} {
    %c1_i32 = arith.constant 1 : i32
    %0 = arith.muli %arg0, %c1_i32 : i32
    %1 = arith.addi %0, %arg2 : i32
    %c0_i32 = arith.constant 0 : i32
    %2 = arith.cmpi eq, %arg2, %c0_i32 : i32
    %3 = arith.extui %2 : i1 to i32
    %c0_i32_0 = arith.constant 0 : i32
    %4 = arith.cmpi ne, %3, %c0_i32_0 : i32
    scf.if %4 {
      %cst = arith.constant 0.000000e+00 : f32
      %16 = vector.broadcast %cst : f32 to vector<2x1xf32>
      %c0 = arith.constant 0 : index
      %c0_7 = arith.constant 0 : index
      %17 = vector.load %arg6[%c0, %c0_7] : memref<2x1xf32, #tpu.memory_space<vmem>>, vector<2x1xf32>
      tpu.vector_store %arg6[%c0, %c0_7], %16 {strides = array<i32>} : memref<2x1xf32, #tpu.memory_space<vmem>>, vector<2x1xf32>,
    } else {
    }
    %c1024_i32 = arith.constant 1024 : i32
    %5 = arith.muli %1, %c1024_i32 : i32
    %c1024_i32_1 = arith.constant 1024 : i32
    %6 = arith.addi %5, %c1024_i32_1 : i32
    %c1024_i32_2 = arith.constant 1024 : i32
    %7 = arith.cmpi sle, %6, %c1024_i32_2 : i32
    %8 = arith.extui %7 : i1 to i32
    %c0_i32_3 = arith.constant 0 : i32
    %9 = arith.cmpi ne, %8, %c0_i32_3 : i32
    scf.if %9 {
      %c0 = arith.constant 0 : index
      %c0_7 = arith.constant 0 : index
      %16 = vector.load %arg6[%c0, %c0_7] : memref<2x1xf32, #tpu.memory_space<vmem>>, vector<2x1xf32>
      %cst = arith.constant 0.000000e+00 : f32
      %17 = vector.broadcast %cst : f32 to vector<2x1xf32>
      %c0_8 = arith.constant 0 : index
      %c0_9 = arith.constant 0 : index
      %18 = vector.load %arg4[%c0_8, %c0_9] : memref<2x1024xf32, #tpu.memory_space<vmem>>, vector<2x1024xf32>
      %c0_10 = arith.constant 0 : index
      %c0_11 = arith.constant 0 : index
      %19 = vector.load %arg3[%c0_10, %c0_11] : memref<1x1024xf32, #tpu.memory_space<vmem>>, vector<1x1024xf32>
      %20 = vector.broadcast %19 : vector<1x1024xf32> to vector<2x1024xf32>
      %21 = arith.mulf %18, %20 : vector<2x1024xf32>
      %cst_12 = arith.constant dense<0.000000e+00> : vector<2xf32>
      %22 = vector.multi_reduction <add>, %21, %cst_12 [1] : vector<2x1024xf32> to vector<2xf32>
      %23 = vector.shape_cast %22 : vector<2xf32> to vector<2x1xf32>
      %24 = arith.addf %17, %23 : vector<2x1xf32>
      %25 = arith.addf %16, %24 : vector<2x1xf32>
      %c0_13 = arith.constant 0 : index
      %c0_14 = arith.constant 0 : index
      %26 = vector.load %arg6[%c0_13, %c0_14] : memref<2x1xf32, #tpu.memory_space<vmem>>, vector<2x1xf32>
      tpu.vector_store %arg6[%c0_13, %c0_14], %25 {strides = array<i32>} : memref<2x1xf32, #tpu.memory_space<vmem>>, vector<2x1xf32>,
    } else {
    }
    %true = arith.constant true
    %10 = arith.xori %7, %true : i1
    %11 = arith.extui %10 : i1 to i32
    %c0_i32_4 = arith.constant 0 : i32
    %12 = arith.cmpi ne, %11, %c0_i32_4 : i32
    scf.if %12 {
      %c0 = arith.constant 0 : index
      %c0_7 = arith.constant 0 : index
      %16 = vector.load %arg6[%c0, %c0_7] : memref<2x1xf32, #tpu.memory_space<vmem>>, vector<2x1xf32>
      %cst = arith.constant 0.000000e+00 : f32
      %17 = vector.broadcast %cst : f32 to vector<2x1xf32>
      %c0_8 = arith.constant 0 : index
      %c0_9 = arith.constant 0 : index
      %18 = vector.load %arg4[%c0_8, %c0_9] : memref<2x1024xf32, #tpu.memory_space<vmem>>, vector<2x1024xf32>
      %c0_10 = arith.constant 0 : index
      %c0_11 = arith.constant 0 : index
      %19 = vector.load %arg3[%c0_10, %c0_11] : memref<1x1024xf32, #tpu.memory_space<vmem>>, vector<1x1024xf32>
      %20 = vector.broadcast %19 : vector<1x1024xf32> to vector<2x1024xf32>
      %21 = arith.mulf %18, %20 : vector<2x1024xf32>
      %22 = tpu.iota {dimensions = array<i32: 1>} : vector<2x1024xi32>
      %c1024_i32_12 = arith.constant 1024 : i32
      %23 = arith.muli %1, %c1024_i32_12 : i32
      %c0_i32_13 = arith.constant 0 : i32
      %24 = arith.addi %23, %c0_i32_13 : i32
      %25 = vector.broadcast %24 : i32 to vector<2x1024xi32>
      %26 = arith.addi %25, %22 : vector<2x1024xi32>
      %c1024_i32_14 = arith.constant 1024 : i32
      %27 = vector.broadcast %c1024_i32_14 : i32 to vector<2x1024xi32>
      %28 = arith.cmpi slt, %26, %27 : vector<2x1024xi32>
      %c0_i32_15 = arith.constant 0 : i32
      %29 = arith.sitofp %c0_i32_15 : i32 to f32
      %30 = vector.broadcast %29 : f32 to vector<2x1024xf32>
      %31 = arith.select %28, %21, %30 : vector<2x1024xi1>, vector<2x1024xf32>
      %cst_16 = arith.constant dense<0.000000e+00> : vector<2xf32>
      %32 = vector.multi_reduction <add>, %31, %cst_16 [1] : vector<2x1024xf32> to vector<2xf32>
      %33 = vector.shape_cast %32 : vector<2xf32> to vector<2x1xf32>
      %34 = arith.addf %17, %33 : vector<2x1xf32>
      %35 = arith.addf %16, %34 : vector<2x1xf32>
      %c0_17 = arith.constant 0 : index
      %c0_18 = arith.constant 0 : index
      %36 = vector.load %arg6[%c0_17, %c0_18] : memref<2x1xf32, #tpu.memory_space<vmem>>, vector<2x1xf32>
      tpu.vector_store %arg6[%c0_17, %c0_18], %35 {strides = array<i32>} : memref<2x1xf32, #tpu.memory_space<vmem>>, vector<2x1xf32>,
    } else {
    }
    %c0_i32_5 = arith.constant 0 : i32
    %13 = arith.cmpi eq, %arg2, %c0_i32_5 : i32
    %14 = arith.extui %13 : i1 to i32
    %c0_i32_6 = arith.constant 0 : i32
    %15 = arith.cmpi ne, %14, %c0_i32_6 : i32
    scf.if %15 {
      %c0 = arith.constant 0 : index
      %c0_7 = arith.constant 0 : index
      %16 = vector.load %arg6[%c0, %c0_7] : memref<2x1xf32, #tpu.memory_space<vmem>>, vector<2x1xf32>
      %17 = tpu.iota {dimensions = array<i32: 0>} : vector<2x2xi32>
      %18 = tpu.iota {dimensions = array<i32: 1>} : vector<2x2xi32>
      %19 = arith.cmpi eq, %17, %18 : vector<2x2xi32>
      %cst = arith.constant 0.000000e+00 : f32
      %20 = vector.shape_cast %16 : vector<2x1xf32> to vector<2x1xf32>
      %21 = vector.broadcast %20 : vector<2x1xf32> to vector<2x2xf32>
      %22 = vector.broadcast %cst : f32 to vector<2x2xf32>
      %23 = arith.select %19, %21, %22 : vector<2x2xi1>, vector<2x2xf32>
      %cst_8 = arith.constant dense<0.000000e+00> : vector<2xf32>
      %24 = vector.multi_reduction <add>, %23, %cst_8 [0] : vector<2x2xf32> to vector<2xf32>
      %25 = vector.shape_cast %24 : vector<2xf32> to vector<1x2xf32>
      %26 = vector.shape_cast %25 : vector<1x2xf32> to vector<1x1x1x2xf32>
      %c0_9 = arith.constant 0 : index
      %c0_10 = arith.constant 0 : index
      %c0_11 = arith.constant 0 : index
      %c0_12 = arith.constant 0 : index
      %27 = vector.load %arg5[%c0_9, %c0_10, %c0_11, %c0_12] : memref<1x1x1x2xf32, #tpu.memory_space<vmem>>, vector<1x1x1x2xf32>
      tpu.vector_store %arg5[%c0_9, %c0_10, %c0_11, %c0_12], %26 {strides = array<i32>} : memref<1x1x1x2xf32, #tpu.memory_space<vmem>>, vector<1x1x1x2xf32>,
    } else {
    }
    return
  }
  func.func @transform_0(%arg0: i32, %arg1: i32, %arg2: i32) -> (i32, i32) {
    %c0_i32 = arith.constant 0 : i32
    %c0_i32_0 = arith.constant 0 : i32
    %c0_i32_1 = arith.constant 0 : i32
    return %c0_i32, %c0_i32_0 : i32, i32
  }
  func.func @transform_1(%arg0: i32, %arg1: i32, %arg2: i32) -> (i32, i32) {
    %c1_i32 = arith.constant 1 : i32
    %0 = arith.muli %arg0, %c1_i32 : i32
    %1 = arith.addi %0, %arg2 : i32
    %c0_i32 = arith.constant 0 : i32
    return %arg1, %1 : i32, i32
  }
  func.func @transform_2(%arg0: i32, %arg1: i32, %arg2: i32) -> (i32, i32, i32, i32) {
    %c0_i32 = arith.constant 0 : i32
    %c0_i32_0 = arith.constant 0 : i32
    %c0_i32_1 = arith.constant 0 : i32
    return %arg0, %arg1, %c0_i32, %c0_i32_0 : i32, i32, i32, i32
  }
}

</mosaic_0001>

<bundles_post_ra>
// kernel: tpu_custom_call.1
= control target key start
LH: loop header
LB: loop body
LE: loop exit
PB: predicated region body
PF: predicated region fallthrough
CT: control target
= control target key end

     0   :  { %7 = vsyncpa [#allocation4], 0  ;;  %s543_s0 = inlined_call_operand.hbm [shape: f32[1,1024], index: 0, kind: input, shape index: {}]   ;;  %s544_s1 = inlined_call_operand.hbm [shape: f32[2,1024], index: 1, kind: input, shape index: {}]   ;;  %s545_s2 = inlined_call_operand.hbm [shape: f32[1,1,1,2], index: 2, kind: output, shape index: {}]  }
   0x1   :  { %8 = vsyncpa [#allocation7], 0 }
   0x2   :  { %9 = vsyncpa [#allocation5], 0  ;;  %s489_s9 = smov [#allocation3]   ;;  %s490_s11 = smov [#allocation6]  }
   0x3   :  { %s16_s10 = sshll.u32 %s489_s9, 4  ;;  %s30_s12 = sshll.u32 %s490_s11, 4  ;;  %s17_s10 = int_to_ptr.vmem [resolvable:$true] %s16_s10  ;;  %s31_s12 = int_to_ptr.vmem [resolvable:$true] %s30_s12 }
   0x4   :  { %s431_s13 = scalar_lea.vmem %s17_s10, 128  ;;  %p436_p1 = scmp.lt.s32.totalorder %s17_s10, %s17_s10 }
   0x5   :  { %p432_p0 = scmp.ne.s32.totalorder %s17_s10, %s431_s13  ;;  %p437_p2 = scmp.lt.s32.totalorder %s431_s13, %s431_s13 }
   0x7   :  { %p438_p3 = por %p437_p2, %p436_p1 }
   0x9   :  { %p439_p4 = pnand %p438_p3, %p432_p0 }
   0xb   :  { %442 = shalt.err (!%p439_p4)
}
   0xc   :  { %19 = dma.hbm_to_vmem [thread:$0]  %s543_s0, 128, %s17_s10, [#allocation4]  }
   0xd   :  { %s451_s16 = scalar_lea.vmem %s31_s12, 256  ;;  %p456_p6 = scmp.lt.s32.totalorder %s31_s12, %s31_s12 }
   0xe   :  { %p452_p5 = scmp.ne.s32.totalorder %s31_s12, %s451_s16  ;;  %p457_p7 = scmp.lt.s32.totalorder %s451_s16, %s451_s16 }
  0x10   :  { %p458_p8 = por %p457_p7, %p456_p6 }
  0x12   :  { %p459_p9 = pnand %p458_p8, %p452_p5 }
  0x14   :  { %462 = shalt.err (!%p459_p9)
}
  0x15   :  { %33 = dma.hbm_to_vmem [thread:$0]  %s544_s1, 256, %s31_s12, [#allocation7]  }
  0x16   :  { %483 = dma.done.wait [#allocation4], 128  }
  0x17   :  { %484 = vsyncadd [#allocation4], 4294967168 }
  0x18   :  { %485 = dma.done.wait [#allocation7], 256  }
  0x19   :  { %486 = vsyncadd [#allocation7], 4294967040  ;;  %v60_v0 = vlaneseq  ;;  %vm47_vm0 = vcmask 1024   ;;  %v491_v1 = vmov 1983009808   ;;  %v492_v4 = vmov 0.0  }
  0x1a   :  { %v95_v2 = vunpack.c.l.s4 %v491_v1  ;;  %48 = vst.msk [vmem:[#allocation2] sm:$0x3] %vm47_vm0, %v492_v4  ;;  %v58_v14 = vld [vmem:[#allocation3] sm:$0xff]  ;;  %v56_v30 = vld [vmem:[#allocation6] sm:$0xff]  ;;  %v57_v33 = vld [vmem:[#allocation6 + $0x8] sm:$0xff]  ;;  %vm174_vm1 = vcmask 1041408  }
  0x1b   :  { %v517_v3 = vshrl.u32 %v60_v0, 7  ;;  %v493_v63 = vmov 0   ;;  %v382_v1 = vand.u32 127, %v60_v0  ;;  %vm390_vm3 = vcmask 9216   ;;  %s494_s0 = smov [#allocation8]  }
  0x1c   :  { %v96_v5 = vunpack.c.0.s8 %v95_v2  ;;  %422 = vset.pattern.permute.xlu0 %v493_v63  ;;  %s406_s1 = sshll.u32 %s494_s0, 4  ;;  %vm398_vm4 = vcmask 8192   ;;  %s407_s1 = int_to_ptr.vmem [resolvable:$true] %s406_s1 }
  0x1d   :  { %v62_v6 = vsub.s32 0, %v517_v3  ;;  %v66_v7 = vsub.s32 1, %v517_v3  ;;  %v70_v8 = vsub.s32 2, %v517_v3  ;;  %v74_v9 = vsub.s32 3, %v517_v3  ;;  %s463_s19 = scalar_lea.vmem %s407_s1, 16  ;;  %s467_s20 = scalar_lea.vmem %s407_s1, 32 }
  0x1e   :  { %v78_v10 = vsub.s32 4, %v517_v3  ;;  %v82_v11 = vsub.s32 5, %v517_v3  ;;  %v86_v12 = vsub.s32 6, %v517_v3  ;;  %v90_v13 = vsub.s32 7, %v517_v3  ;;  %p464_p10 = scmp.ne.s32.totalorder %s407_s1, %s463_s19  ;;  %p468_p11 = scmp.lt.s32.totalorder %s407_s1, %s407_s1 }
  0x1f   :  { %v99_v15 = vsub.s32 %v96_v5, %v517_v3  ;;  %v63_v16 = vrot.slane %v58_v14, %v62_v6  ;;  %v67_v17 = vrot.slane %v58_v14, %v66_v7  ;;  %v71_v18 = vrot.slane %v58_v14, %v70_v8  ;;  %p469_p12 = scmp.lt.s32.totalorder %s467_s20, %s463_s19 }
  0x20   :  { %v75_v19 = vrot.slane %v58_v14, %v74_v9  ;;  %v79_v20 = vrot.slane %v58_v14, %v78_v10  ;;  %v83_v21 = vrot.slane %v58_v14, %v82_v11  ;;  %v87_v22 = vrot.slane %v58_v14, %v86_v12 }
  0x21   :  { %v91_v23 = vrot.slane %v58_v14, %v90_v13  ;;  %v92_v24 = vcombine.low %v63_v16, %v67_v17  ;;  %vm383_vm2 = vcmp.eq.s32.totalorder %v517_v3, %v382_v1  ;;  %v55_v2 = vld [vmem:[#allocation2] sm:$0x3]  ;;  %p470_p13 = por %p469_p12, %p468_p11 }
  0x22   :  { %v93_v25 = vcombine.low %v71_v18, %v75_v19  ;;  %v109_v26 = vcombine.low %v79_v20, %v83_v21 }
  0x23   :  { %v110_v27 = vcombine.low %v87_v22, %v91_v23  ;;  %v100_v28 = vrot.slane %v92_v24, %v99_v15  ;;  %p471_p0 = pnand %p470_p13, %p464_p10 }
  0x24   :  { %v107_v29 = vrot.slane %v93_v25, %v99_v15  ;;  %v117_v31 = vrot.slane %v109_v26, %v99_v15 }
  0x25   :  { %v124_v32 = vrot.slane %v110_v27, %v99_v15 }
  0x26   :  { %v108_v34 = vcombine.low %v100_v28, %v107_v29 }
  0x27   :  { %v125_v35 = vcombine.low %v117_v31, %v124_v32 }
  0x28   :  { %v128_v36 = vmul.f32 %v108_v34, %v56_v30 }
  0x29   :  { %v129_v37 = vmul.f32 %v125_v35, %v57_v33 }
  0x2a   :  { %v132_v38 = vcombine.high %v128_v36, %v128_v36  ;;  %v139_v39 = vrot.slane %v128_v36, %v99_v15 }
  0x2b   :  { %v149_v40 = vcombine.high %v129_v37, %v129_v37  ;;  %v156_v43 = vrot.slane %v129_v37, %v99_v15 }
  0x2c   :  { %v146_v41 = vrot.slane %v132_v38, %v99_v15  ;;  %v147_v42 = vcombine.high %v139_v39, %v139_v39  ;;  %v175_v44 = vsel %vm174_vm1, %v139_v39, 0.0 }
  0x2d   :  { %v163_v49 = vrot.slane %v149_v40, %v99_v15  ;;  %v164_v50 = vcombine.high %v156_v43, %v156_v43  ;;  %v182_v53 = vsel %vm174_vm1, %v156_v43, 0.0 }
  0x2e   :  { %v148_v45 = vcombine.high %v146_v41, %v146_v41  ;;  %v176_v46 = vsel %vm174_vm1, %v147_v42, 0.0  ;;  %v178_v47 = vsel %vm174_vm1, %v146_v41, 0.0 }
  0x2f   :  { %v177_v48 = vadd.f32 %v176_v46, %v175_v44  ;;  %v165_v55 = vcombine.high %v163_v49, %v163_v49  ;;  %v184_v56 = vsel %vm174_vm1, %v164_v50, 0.0  ;;  %v186_v58 = vsel %vm174_vm1, %v163_v49, 0.0 }
  0x30   :  { %v180_v51 = vsel %vm174_vm1, %v148_v45, 0.0 }
  0x31   :  { %v179_v52 = vadd.f32 %v178_v47, %v177_v48  ;;  %v188_v60 = vsel %vm174_vm1, %v165_v55, 0.0 }
  0x33   :  { %v181_v54 = vadd.f32 %v180_v51, %v179_v52 }
  0x35   :  { %v183_v57 = vadd.f32 %v182_v53, %v181_v54 }
  0x37   :  { %v185_v59 = vadd.f32 %v184_v56, %v183_v57 }
  0x39   :  { %v187_v61 = vadd.f32 %v186_v58, %v185_v59 }
  0x3b   :  { %v189_v62 = vadd.f32 %v188_v60, %v187_v61 }
  0x3d   :  { %190 = vadd.xlane.f32.xlu0 %v189_v62 }
  0xc6   :  { %v191_v4 = vpop.xlane.xlu0 %190 }
  0xc7   :  { %v193_v5 = vadd.f32 %v191_v4, %v55_v2 }
  0xc9   :  { %195 = vst.msk [vmem:[#allocation2] sm:$0x3] %vm47_vm0, %v193_v5 }
  0xd0   :  { %v378_v6 = vld [vmem:[#allocation2] sm:$0x3] }
  0xd1   :  { %386 = vperm.xlu0 %422, %v378_v6  }
 0x14c   :  { %v387_v7 = vpop.permute.xlu0 %386 }
 0x14d   :  { %v389_v8 = vsel %vm383_vm2, %v387_v7, 0.0 }
 0x14e   :  { %v391_v9 = vsel %vm390_vm3, %v389_v8, 0.0 }
 0x14f   :  { %v392_v10 = vrot.slane %v391_v9, 4 }
 0x151   :  { %v393_v11 = vadd.f32 %v392_v10, %v391_v9 }
 0x153   :  { %v394_v12 = vrot.slane %v393_v11, 2 }
 0x155   :  { %v395_v13 = vadd.f32 %v394_v12, %v393_v11 }
 0x157   :  { %v396_v0 = vrot.slane %v395_v13, 1 }
 0x159   :  { %v397_v3 = vadd.f32 %v396_v0, %v395_v13 }
 0x15b   :  { %399 = vst.msk [vmem:[#allocation8] sm:$0x1] %vm398_vm4, %v397_v3 }
 0x15c   :  { %474 = shalt.err (!%p471_p0)
}
 0x15d   :  { %409 = dma.vmem_to_hbm [thread:$0]  %s407_s1, 16, %s545_s2, [#allocation5]  }
 0x15e   :  { %487 = dma.done.wait [#allocation5], 16  }
 0x15f   :  { %488 = vsyncadd [#allocation5], 4294967280 }
 0x160   :  { %413 = vsyncpa [#allocation4], 1 }
 0x161   :  { %414 = vsyncpa [#allocation7], 1 }
 0x162   :  { %415 = vsyncpa [#allocation5], 1 }

</bundles_post_ra>
